<compile_context>
chip_gen: v5e
topology: v5e:2x2
jax: 0.10.0
libtpu: 0.0.40
codegen_flags: <defaults>
</compile_context>

<pallas_src>
import functools
import math

import jax
import jax.numpy as jnp
from jax import lax
from jax.experimental import pallas as pl
from jax.experimental.pallas import tpu as pltpu

_LANE = 128
_SUBLANE_BF16 = 16                       # bf16 minimum efficient tile is (16, 128)
_COMPUTE_DTYPE = jnp.bfloat16            # MXU / product dtype; accumulation in f32
_MAX_TILE_ROWS = 2048
_MAX_CAND_CHUNK = 32                     # candidates processed per in-kernel chunk
_VMEM_BUDGET_BYTES = 48 * 1024 * 1024    # tile-sizing target (fits v7x's 64 MiB)
_VMEM_LIMIT_BYTES = 56 * 1024 * 1024     # raise the 16/32 MiB scoped defaults


# ------------------------------------------------------------------ helpers ---

def _round_up(n, m):
    return ((n + m - 1) // m) * m


def _pad_to(x, shape):
    pads = [(0, t - s) for s, t in zip(x.shape, shape)]
    if all(p == (0, 0) for p in pads):
        return x
    return jnp.pad(x, pads)


def _log_sigmoid(x):
    # stable log(sigmoid(x)) = min(x, 0) - log(1 + exp(-|x|))   (no -inf / NaN)
    return jnp.minimum(x, 0.0) - jnp.log(1.0 + jnp.exp(-jnp.abs(x)))


def _weights_vmem_bytes(dims):
    f_p, h1_p, h2_p, e_p = dims
    # bf16 weights counted double-buffered (conservative) + f32 biases.
    return 4 * (f_p * h1_p + h1_p * h2_p + h2_p * e_p) + 8 * (h1_p + h2_p + e_p)


def _pick_tile(batch, per_row_bytes, fixed_bytes):
    """Largest 16-row-aligned batch tile that keeps the kernel inside the VMEM budget."""
    avail = max(_VMEM_BUDGET_BYTES - fixed_bytes, per_row_bytes)
    tb = avail // per_row_bytes
    tb -= tb % _SUBLANE_BF16
    tb = max(_SUBLANE_BF16, tb)
    tb = min(tb, _MAX_TILE_ROWS, _round_up(batch, _SUBLANE_BF16))
    return int(tb)


def _pad_mlp_weights(w1, b1, w2, b2, w3, b3):
    """Zero-pad every MLP dim to a multiple of 128; weights -> bf16, biases -> f32."""
    f_in, h1 = w1.shape
    h2 = w2.shape[1]
    e = w3.shape[1]
    f_p, h1_p, h2_p, e_p = (_round_up(d, _LANE) for d in (f_in, h1, h2, e))
    cd = _COMPUTE_DTYPE
    wts = (
        _pad_to(w1, (f_p, h1_p)).astype(cd), _pad_to(b1, (1, h1_p)).astype(jnp.float32),
        _pad_to(w2, (h1_p, h2_p)).astype(cd), _pad_to(b2, (1, h2_p)).astype(jnp.float32),
        _pad_to(w3, (h2_p, e_p)).astype(cd), _pad_to(b3, (1, e_p)).astype(jnp.float32),
    )
    return wts, (f_p, h1_p, h2_p, e_p)


def _mlp(feat, w1, b1, w2, b2, w3, b3):
    """3-layer ReLU MLP; bf16 matmuls with f32 MXU accumulation + f32 bias/ReLU."""
    # TODO(synk): nn.Dropout applied as identity (eval-mode semantics); training-mode
    # dropout would need pltpu.prng_* masking in-kernel.
    cd = w1.dtype
    h = jnp.maximum(jnp.dot(feat, w1, preferred_element_type=jnp.float32) + b1, 0.0)
    h = jnp.maximum(jnp.dot(h.astype(cd), w2, preferred_element_type=jnp.float32) + b2, 0.0)
    h = jnp.maximum(jnp.dot(h.astype(cd), w3, preferred_element_type=jnp.float32) + b3, 0.0)
    return h                                                        # (tb, E_pad) f32


# ------------------------------------------------------------------ kernels ---

def _hidden_kernel(feat_ref, w1_ref, b1_ref, w2_ref, b2_ref, w3_ref, b3_ref,
                   out_ref):
    h = _mlp(feat_ref[...], w1_ref[...], b1_ref[...], w2_ref[...], b2_ref[...],
             w3_ref[...], b3_ref[...])
    out_ref[...] = h.astype(out_ref.dtype)      # lane-dense bf16 store


def _loss_kernel(feat_ref, cand_ref, w1_ref, b1_ref, w2_ref, b2_ref, w3_ref,
                 b3_ref, part_ref, *, num_chunks, chunk):
    # Fused MLP + sampled-softmax scores: `hidden` never leaves VMEM/vregs.
    hidden = _mlp(feat_ref[...], w1_ref[...], b1_ref[...], w2_ref[...], b2_ref[...],
                  w3_ref[...], b3_ref[...])                        # (tb, E_pad) f32
    hb = hidden.astype(cand_ref.dtype)[:, None, :]                 # (tb, 1, E_pad) bf16

    def chunk_logsig_sum(start):
        # bf16 products, f32-accumulated reduction over E; live intermediate is
        # only (tb, chunk, E_pad).
        blk = cand_ref[:, pl.ds(start, chunk), :]                  # (tb, chunk, E_pad)
        s = jnp.sum(blk * hb, axis=-1, dtype=jnp.float32)          # (tb, chunk) f32
        # candidate 0 is the positive (+score); every other slot is a negative
        # (-score).  Zero-embedding padding slots score 0 and are corrected by
        # a closed-form constant outside the kernel (no per-tile masking).
        gidx = start + lax.broadcasted_iota(jnp.int32, (1, chunk), 1)
        sign = jnp.where(gidx == 0, 1.0, -1.0)
        return jnp.sum(_log_sigmoid(sign * s))

    if num_chunks == 1:
        total = chunk_logsig_sum(0)
    else:
        total = lax.fori_loop(
            0, num_chunks,
            lambda c, acc: acc + chunk_logsig_sum(pl.multiple_of(c * chunk, chunk)),
            jnp.float32(0.0))

    # One lane-dense partial per batch tile (summed host-side): batch axis is
    # fully "parallel" -> megacore-shardable, no cross-iteration accumulator.
    part_ref[...] = jnp.broadcast_to(total, part_ref.shape).astype(jnp.float32)


# ----------------------------------------------------------------- wrappers ---

def _weight_specs(dims):
    f_p, h1_p, h2_p, e_p = dims
    return [
        pl.BlockSpec((f_p, h1_p), lambda i: (0, 0)),
        pl.BlockSpec((1, h1_p), lambda i: (0, 0)),
        pl.BlockSpec((h1_p, h2_p), lambda i: (0, 0)),
        pl.BlockSpec((1, h2_p), lambda i: (0, 0)),
        pl.BlockSpec((h2_p, e_p), lambda i: (0, 0)),
        pl.BlockSpec((1, e_p), lambda i: (0, 0)),
    ]


def _mlp_hidden(features, wts, dims, out_dim):
    batch = features.shape[0]
    f_p, h1_p, h2_p, e_p = dims

    # bytes per batch row: feat in (bf16, 2 buffers) + hidden out (bf16, 2
    # buffers) + f32/bf16 activation intermediates.
    per_row = 4 * f_p + 4 * e_p + 6 * (h1_p + h2_p + e_p)
    tb = _pick_tile(batch, per_row, _weights_vmem_bytes(dims))
    b_pad = _round_up(batch, tb)

    feat = _pad_to(features, (b_pad, f_p)).astype(_COMPUTE_DTYPE)

    hidden = pl.pallas_call(
        _hidden_kernel,
        out_shape=jax.ShapeDtypeStruct((b_pad, e_p), _COMPUTE_DTYPE),
        grid=(b_pad // tb,),
        in_specs=[pl.BlockSpec((tb, f_p), lambda i: (i, 0))] + _weight_specs(dims),
        out_specs=pl.BlockSpec((tb, e_p), lambda i: (i, 0)),
        compiler_params=pltpu.CompilerParams(
            dimension_semantics=("parallel",),
            vmem_limit_bytes=_VMEM_LIMIT_BYTES),
    )(feat, *wts)
    return hidden[:batch, :out_dim].astype(jnp.float32)


def _sampled_softmax_loss(features, cand, n_cand, wts, dims):
    batch = features.shape[0]
    f_p, h1_p, h2_p, e_p = dims

    chunk = min(_MAX_CAND_CHUNK, _round_up(n_cand, 8))
    cand_pad = _round_up(n_cand, chunk)
    num_chunks = cand_pad // chunk

    # bytes per batch row: feat + candidates (bf16, double-buffered), MLP
    # intermediates, one chunk of the bf16 product + f32 scores.
    per_row = (4 * f_p + 4 * cand_pad * e_p
               + 6 * (h1_p + h2_p + e_p)
               + 2 * chunk * e_p + 8 * chunk)
    tb = _pick_tile(batch, per_row, _weights_vmem_bytes(dims))
    b_pad = _round_up(batch, tb)
    num_tiles = b_pad // tb

    cd = _COMPUTE_DTYPE
    feat = _pad_to(features, (b_pad, f_p)).astype(cd)
    cand_p = _pad_to(cand, (b_pad, cand_pad, e_p)).astype(cd)

    kernel = functools.partial(_loss_kernel, num_chunks=num_chunks, chunk=chunk)
    partials = pl.pallas_call(
        kernel,
        out_shape=jax.ShapeDtypeStruct((num_tiles * 8, _LANE), jnp.float32),
        grid=(num_tiles,),
        in_specs=[pl.BlockSpec((tb, f_p), lambda i: (i, 0)),
                  pl.BlockSpec((tb, cand_pad, e_p), lambda i: (i, 0, 0))]
                 + _weight_specs(dims),
        out_specs=pl.BlockSpec((8, _LANE), lambda i: (i, 0)),
        compiler_params=pltpu.CompilerParams(
            dimension_semantics=("parallel",),
            vmem_limit_bytes=_VMEM_LIMIT_BYTES),
    )(feat, cand_p, *wts)

    total = jnp.sum(partials[::8, 0])          # one scalar partial per batch tile

    # Every zero-padded (row, candidate) slot scores exactly 0 and therefore
    # contributes exactly log(sigmoid(0)) = -log 2; remove them with a
    # compile-time constant instead of per-tile masking inside the kernel.
    n_pad_terms = b_pad * cand_pad - batch * n_cand
    if n_pad_terms:
        total = total + jnp.float32(n_pad_terms * math.log(2.0))
    return -total / batch


@jax.jit
def youtube_net_forward(params, click_history, positives=None,
                        discrete_features=None, real_value_features=None,
                        negatives=None):
    """Matches YoutubeNetModel.forward: returns loss if positives given, else hidden."""
    # --- glue (XLA): embedding gathers + history mean + feature concat.  XLA
    # fuses gather -> mean -> concat so only the lane-dense (B, F) slab hits
    # HBM, never the (B, H, E) history blob.
    # TODO(synk): for very large vocabularies this gather could move in-kernel
    # via PrefetchScalarGridSpec + manual row DMA.
    hist_mean = jnp.mean(params["item_emb"][click_history], axis=1)     # (B, E)
    parts = [hist_mean]
    if discrete_features is not None:
        parts += [params["disc_emb"][i][f] for i, f in enumerate(discrete_features)]
    if real_value_features is not None:
        parts.append(real_value_features)
    features = jnp.concatenate(parts, axis=-1)                          # (B, F)

    wts, dims = _pad_mlp_weights(params["w1"], params["b1"], params["w2"],
                                 params["b2"], params["w3"], params["b3"])
    emb_dim = params["w3"].shape[1]

    if positives is None:
        return _mlp_hidden(features, wts, dims, emb_dim)

    pos_emb = params["loss_emb"][positives]                             # (B, E)
    neg_emb = params["loss_emb"][negatives]                             # (B, N, E)
    cand = jnp.concatenate([pos_emb[:, None, :], neg_emb], axis=1)      # (B, 1+N, E)
    return _sampled_softmax_loss(features, cand, cand.shape[1], wts, dims)


# ------------------------------------------------------------------- params ---

def init_params(key, num_items, item_emb_dims, discrete_vocab_sizes,
                discrete_emb_dims, num_real_values):
    emb = item_emb_dims
    d_total = len(discrete_vocab_sizes) * discrete_emb_dims
    feat_dims = emb + d_total + num_real_values
    hdims = [emb * 4, emb * 2, emb]

    def uniform(k, shape, rng):
        return jax.random.uniform(k, shape, jnp.float32, minval=-rng, maxval=rng)

    n_keys = 2 + len(discrete_vocab_sizes) + 6
    ks = list(jax.random.split(key, n_keys))

    item_rng = 0.5 / emb
    disc_rng = 0.5 / discrete_emb_dims
    params = {
        # padding_idx=0 row is overwritten by uniform_ in _init_embedding_weights,
        # so row 0 is NOT zero -- matched here.
        "item_emb": uniform(ks.pop(), (num_items, emb), item_rng),
        "loss_emb": uniform(ks.pop(), (num_items, emb), item_rng),
        "disc_emb": [uniform(ks.pop(), (v, discrete_emb_dims), disc_rng)
                     for v in discrete_vocab_sizes],
    }

    def linear(kw, kb, fan_in, fan_out):
        lim = 1.0 / (fan_in ** 0.5)
        # stored (in, out) so the kernel computes y = x @ W + b (same math as nn.Linear)
        return uniform(kw, (fan_in, fan_out), lim), uniform(kb, (1, fan_out), lim)

    params["w1"], params["b1"] = linear(ks.pop(), ks.pop(), feat_dims, hdims[0])
    params["w2"], params["b2"] = linear(ks.pop(), ks.pop(), hdims[0], hdims[1])
    params["w3"], params["b3"] = linear(ks.pop(), ks.pop(), hdims[1], hdims[2])
    return params


if __name__ == "__main__":
    num_items = 64
    item_emb_dims = 32
    discrete_vocab_sizes = [8, 8]
    discrete_emb_dims = 16
    num_real_values = 4
    num_negatives = 5
    B, Hlen = 4, 8

    key = jax.random.PRNGKey(0)
    k_param, k_hist, k_d0, k_d1, k_real, k_pos, k_neg = jax.random.split(key, 7)

    params = init_params(k_param, num_items, item_emb_dims,
                         discrete_vocab_sizes, discrete_emb_dims, num_real_values)

    click_history = jax.random.randint(k_hist, (B, Hlen), 0, num_items)       # (B, H)
    discrete_features = [
        jax.random.randint(k_d0, (B,), 0, discrete_vocab_sizes[0]),
        jax.random.randint(k_d1, (B,), 0, discrete_vocab_sizes[1]),
    ]
    real_value_features = jax.random.normal(k_real, (B, num_real_values), jnp.float32)
    positives = jax.random.randint(k_pos, (B,), 1, num_items)                 # (B,)
    # negative sampling (padding=True -> ids in [1, vocab-1)); RNG glue in JAX
    negatives = jax.random.randint(k_neg, (B, num_negatives), 1, num_items - 1)

    # inference branch (positives=None): returns hidden (B, E)
    hidden = youtube_net_forward(params, click_history,
                                 discrete_features=discrete_features,
                                 real_value_features=real_value_features)

    # training branch: fused MLP + sampled-softmax loss in one Pallas kernel
    loss = youtube_net_forward(params, click_history, positives=positives,
                               discrete_features=discrete_features,
                               real_value_features=real_value_features,
                               negatives=negatives)

    jax.block_until_ready((hidden, loss))
    assert hidden.shape == (B, item_emb_dims)
    assert loss.shape == ()
    assert bool(jnp.isfinite(loss))
    assert bool(jnp.all(jnp.isfinite(hidden)))
    print("KERNEL_OK")
</pallas_src>

<mosaic_0001>
module attributes {stable_mosaic.version = 11 : i64} {
  func.func @_hidden_kernel(%arg0: i32, %arg1: memref<16x128xbf16, #tpu.memory_space<vmem>>, %arg2: memref<128x128xbf16, #tpu.memory_space<vmem>>, %arg3: memref<1x128xf32, #tpu.memory_space<vmem>>, %arg4: memref<128x128xbf16, #tpu.memory_space<vmem>>, %arg5: memref<1x128xf32, #tpu.memory_space<vmem>>, %arg6: memref<128x128xbf16, #tpu.memory_space<vmem>>, %arg7: memref<1x128xf32, #tpu.memory_space<vmem>>, %arg8: memref<16x128xbf16, #tpu.memory_space<vmem>>) attributes {dimension_semantics = [#tpu.dimension_semantics<parallel>], iteration_bounds = array<i64: 1>, scalar_prefetch = 0 : i64, scratch_operands = 0 : i64, tpu.core_type = #tpu.core_type<tc>, window_params = [{transform_indices = @transform_0, window_bounds = array<i64: 16, 128>}, {pipeline_mode = #tpu.pipeline_mode<synchronous>, transform_indices = @transform_1, window_bounds = array<i64: 128, 128>}, {pipeline_mode = #tpu.pipeline_mode<synchronous>, transform_indices = @transform_2, window_bounds = array<i64: 1, 128>}, {pipeline_mode = #tpu.pipeline_mode<synchronous>, transform_indices = @transform_3, window_bounds = array<i64: 128, 128>}, {pipeline_mode = #tpu.pipeline_mode<synchronous>, transform_indices = @transform_4, window_bounds = array<i64: 1, 128>}, {pipeline_mode = #tpu.pipeline_mode<synchronous>, transform_indices = @transform_5, window_bounds = array<i64: 128, 128>}, {pipeline_mode = #tpu.pipeline_mode<synchronous>, transform_indices = @transform_6, window_bounds = array<i64: 1, 128>}, {transform_indices = @transform_7, window_bounds = array<i64: 16, 128>}]} {
    %c0 = arith.constant 0 : index
    %c0_0 = arith.constant 0 : index
    %0 = vector.load %arg1[%c0, %c0_0] : memref<16x128xbf16, #tpu.memory_space<vmem>>, vector<16x128xbf16>
    %c0_1 = arith.constant 0 : index
    %c0_2 = arith.constant 0 : index
    %1 = vector.load %arg2[%c0_1, %c0_2] : memref<128x128xbf16, #tpu.memory_space<vmem>>, vector<128x128xbf16>
    %c0_3 = arith.constant 0 : index
    %c0_4 = arith.constant 0 : index
    %2 = vector.load %arg3[%c0_3, %c0_4] : memref<1x128xf32, #tpu.memory_space<vmem>>, vector<1x128xf32>
    %c0_5 = arith.constant 0 : index
    %c0_6 = arith.constant 0 : index
    %3 = vector.load %arg4[%c0_5, %c0_6] : memref<128x128xbf16, #tpu.memory_space<vmem>>, vector<128x128xbf16>
    %c0_7 = arith.constant 0 : index
    %c0_8 = arith.constant 0 : index
    %4 = vector.load %arg5[%c0_7, %c0_8] : memref<1x128xf32, #tpu.memory_space<vmem>>, vector<1x128xf32>
    %c0_9 = arith.constant 0 : index
    %c0_10 = arith.constant 0 : index
    %5 = vector.load %arg6[%c0_9, %c0_10] : memref<128x128xbf16, #tpu.memory_space<vmem>>, vector<128x128xbf16>
    %c0_11 = arith.constant 0 : index
    %c0_12 = arith.constant 0 : index
    %6 = vector.load %arg7[%c0_11, %c0_12] : memref<1x128xf32, #tpu.memory_space<vmem>>, vector<1x128xf32>
    %cst = arith.constant dense<0.000000e+00> : vector<16x128xf32>
    %7 = tpu.matmul %0, %1, %cst {dimension_numbers = #tpu.dot_dimension_numbers<[1], [0], [0], [1], [0, 0, 1, 1], [], []>} : vector<16x128xbf16>, vector<128x128xbf16>, vector<16x128xf32> -> vector<16x128xf32>
    %8 = vector.broadcast %2 : vector<1x128xf32> to vector<16x128xf32>
    %9 = arith.addf %7, %8 : vector<16x128xf32>
    %cst_13 = arith.constant 0.000000e+00 : f32
    %10 = vector.broadcast %cst_13 : f32 to vector<16x128xf32>
    %11 = arith.maximumf %9, %10 : vector<16x128xf32>
    %12 = arith.truncf %11 : vector<16x128xf32> to vector<16x128xbf16>
    %cst_14 = arith.constant dense<0.000000e+00> : vector<16x128xf32>
    %13 = tpu.matmul %12, %3, %cst_14 {dimension_numbers = #tpu.dot_dimension_numbers<[1], [0], [0], [1], [0, 0, 1, 1], [], []>} : vector<16x128xbf16>, vector<128x128xbf16>, vector<16x128xf32> -> vector<16x128xf32>
    %14 = vector.broadcast %4 : vector<1x128xf32> to vector<16x128xf32>
    %15 = arith.addf %13, %14 : vector<16x128xf32>
    %cst_15 = arith.constant 0.000000e+00 : f32
    %16 = vector.broadcast %cst_15 : f32 to vector<16x128xf32>
    %17 = arith.maximumf %15, %16 : vector<16x128xf32>
    %18 = arith.truncf %17 : vector<16x128xf32> to vector<16x128xbf16>
    %cst_16 = arith.constant dense<0.000000e+00> : vector<16x128xf32>
    %19 = tpu.matmul %18, %5, %cst_16 {dimension_numbers = #tpu.dot_dimension_numbers<[1], [0], [0], [1], [0, 0, 1, 1], [], []>} : vector<16x128xbf16>, vector<128x128xbf16>, vector<16x128xf32> -> vector<16x128xf32>
    %20 = vector.broadcast %6 : vector<1x128xf32> to vector<16x128xf32>
    %21 = arith.addf %19, %20 : vector<16x128xf32>
    %cst_17 = arith.constant 0.000000e+00 : f32
    %22 = vector.broadcast %cst_17 : f32 to vector<16x128xf32>
    %23 = arith.maximumf %21, %22 : vector<16x128xf32>
    %24 = arith.truncf %23 : vector<16x128xf32> to vector<16x128xbf16>
    %c0_18 = arith.constant 0 : index
    %c0_19 = arith.constant 0 : index
    %25 = vector.load %arg8[%c0_18, %c0_19] : memref<16x128xbf16, #tpu.memory_space<vmem>>, vector<16x128xbf16>
    tpu.vector_store %arg8[%c0_18, %c0_19], %24 {strides = array<i32>} : memref<16x128xbf16, #tpu.memory_space<vmem>>, vector<16x128xbf16>,
    return
  }
  func.func @transform_0(%arg0: i32) -> (i32, i32) {
    %c0_i32 = arith.constant 0 : i32
    %c0_i32_0 = arith.constant 0 : i32
    return %arg0, %c0_i32 : i32, i32
  }
  func.func @transform_1(%arg0: i32) -> (i32, i32) {
    %c0_i32 = arith.constant 0 : i32
    %c0_i32_0 = arith.constant 0 : i32
    %c0_i32_1 = arith.constant 0 : i32
    return %c0_i32, %c0_i32_0 : i32, i32
  }
  func.func @transform_2(%arg0: i32) -> (i32, i32) {
    %c0_i32 = arith.constant 0 : i32
    %c0_i32_0 = arith.constant 0 : i32
    %c0_i32_1 = arith.constant 0 : i32
    return %c0_i32, %c0_i32_0 : i32, i32
  }
  func.func @transform_3(%arg0: i32) -> (i32, i32) {
    %c0_i32 = arith.constant 0 : i32
    %c0_i32_0 = arith.constant 0 : i32
    %c0_i32_1 = arith.constant 0 : i32
    return %c0_i32, %c0_i32_0 : i32, i32
  }
  func.func @transform_4(%arg0: i32) -> (i32, i32) {
    %c0_i32 = arith.constant 0 : i32
    %c0_i32_0 = arith.constant 0 : i32
    %c0_i32_1 = arith.constant 0 : i32
    return %c0_i32, %c0_i32_0 : i32, i32
  }
  func.func @transform_5(%arg0: i32) -> (i32, i32) {
    %c0_i32 = arith.constant 0 : i32
    %c0_i32_0 = arith.constant 0 : i32
    %c0_i32_1 = arith.constant 0 : i32
    return %c0_i32, %c0_i32_0 : i32, i32
  }
  func.func @transform_6(%arg0: i32) -> (i32, i32) {
    %c0_i32 = arith.constant 0 : i32
    %c0_i32_0 = arith.constant 0 : i32
    %c0_i32_1 = arith.constant 0 : i32
    return %c0_i32, %c0_i32_0 : i32, i32
  }
  func.func @transform_7(%arg0: i32) -> (i32, i32) {
    %c0_i32 = arith.constant 0 : i32
    %c0_i32_0 = arith.constant 0 : i32
    return %arg0, %c0_i32 : i32, i32
  }
}

</mosaic_0001>

<bundles_post_ra>
// kernel: youtube_net_forward.1
= control target key start
LH: loop header
LB: loop body
LE: loop exit
PB: predicated region body
PF: predicated region fallthrough
CT: control target
= control target key end

     0   :  { %s556_s1 = inlined_call_operand.vmem [shape: bf16[128,128], index: 1, kind: input, shape index: {}]   ;;  %s557_s3 = inlined_call_operand.vmem [shape: bf16[128,128], index: 3, kind: input, shape index: {}]   ;;  %s558_s2 = inlined_call_operand.vmem [shape: f32[1,128], index: 2, kind: input, shape index: {}]   ;;  %s559_s0 = inlined_call_operand.vmem [shape: bf16[16,128], index: 0, kind: input, shape index: {}]   ;;  %s560_s4 = inlined_call_operand.vmem [shape: f32[1,128], index: 4, kind: input, shape index: {}]   ;;  %s561_s5 = inlined_call_operand.vmem [shape: bf16[128,128], index: 5, kind: input, shape index: {}]   ;;  %s562_s6 = inlined_call_operand.vmem [shape: f32[1,128], index: 6, kind: input, shape index: {}]   ;;  %s563_s7 = inlined_call_operand.vmem [shape: bf16[16,128], index: 7, kind: output, shape index: {}]  }
   0x1   :  { %v404_v0 = vld [vmem:[%s556_s1 + $0x38] sm:$0xff]  ;;  %v403_v1 = vld [vmem:[%s556_s1 + $0x30] sm:$0xff]  ;;  %v402_v4 = vld [vmem:[%s556_s1 + $0x28] sm:$0xff] }
   0x2   :  { %136 = vmatpush.bf16.msra.mxu0 %v404_v0  ;;  %v412_v2 = vld [vmem:[%s557_s3 + $0x38] sm:$0xff]  ;;  %v411_v3 = vld [vmem:[%s557_s3 + $0x30] sm:$0xff]  ;;  %v410_v5 = vld [vmem:[%s557_s3 + $0x28] sm:$0xff] }
   0x3   :  { %204 = vmatpush.bf16.msra.mxu1 %v412_v2  ;;  %v401_v6 = vld [vmem:[%s556_s1 + $0x20] sm:$0xff]  ;;  %v400_v8 = vld [vmem:[%s556_s1 + $0x18] sm:$0xff]  ;;  %v399_v9 = vld [vmem:[%s556_s1 + $0x10] sm:$0xff] }
   0x4   :  { %v409_v7 = vld [vmem:[%s557_s3 + $0x20] sm:$0xff]  ;;  %v398_v10 = vld [vmem:[%s556_s1 + $0x8] sm:$0xff]  ;;  %v408_v13 = vld [vmem:[%s557_s3 + $0x18] sm:$0xff] }
   0x5   :  { %v397_v11 = vld [vmem:[%s556_s1] sm:$0xff]  ;;  %v407_v14 = vld [vmem:[%s557_s3 + $0x10] sm:$0xff]  ;;  %v406_v15 = vld [vmem:[%s557_s3 + $0x8] sm:$0xff] }
   0x6   :  { %137 = vmatpush.bf16.msra.mxu0 %v403_v1  ;;  %v396_v12 = vld [vmem:[%s559_s0] sm:$0xff]  ;;  %v420_v17 = vld [vmem:[%s561_s5 + $0x38] sm:$0xff]  ;;  %v419_v18 = vld [vmem:[%s561_s5 + $0x30] sm:$0xff] }
   0x7   :  { %205 = vmatpush.bf16.msra.mxu1 %v411_v3  ;;  %v405_v16 = vld [vmem:[%s557_s3] sm:$0xff]  ;;  %272 = vmatpush.bf16.msra.mxu2 %v420_v17  ;;  %v418_v19 = vld [vmem:[%s561_s5 + $0x28] sm:$0xff]  ;;  %v416_v29 = vld [vmem:[%s561_s5 + $0x18] sm:$0xff] }
   0x8   :  { %v417_v20 = vld [vmem:[%s561_s5 + $0x20] sm:$0xff]  ;;  %v415_v30 = vld [vmem:[%s561_s5 + $0x10] sm:$0xff]  ;;  %v414_v31 = vld [vmem:[%s561_s5 + $0x8] sm:$0xff] }
   0x9   :  { %v426_v22 = vld [vmem:[%s558_s2] ss:$0 sm:$0xff] }
   0xa   :  { %138 = vmatpush.bf16.msra.mxu0 %v402_v4  ;;  %v413_v32 = vld [vmem:[%s561_s5] sm:$0xff] }
   0xb   :  { %206 = vmatpush.bf16.msra.mxu1 %v410_v5  ;;  %273 = vmatpush.bf16.msra.mxu2 %v419_v18  ;;  %v427_v34 = vld [vmem:[%s560_s4] ss:$0 sm:$0xff] }
   0xc   :  { %v428_v42 = vld [vmem:[%s562_s6] ss:$0 sm:$0xff] }
   0xe   :  { %139 = vmatpush.bf16.msra.mxu0 %v401_v6 }
   0xf   :  { %207 = vmatpush.bf16.msra.mxu1 %v409_v7  ;;  %274 = vmatpush.bf16.msra.mxu2 %v418_v19 }
  0x12   :  { %140 = vmatpush.bf16.msra.mxu0 %v400_v8 }
  0x13   :  { %208 = vmatpush.bf16.msra.mxu1 %v408_v13  ;;  %275 = vmatpush.bf16.msra.mxu2 %v417_v20 }
  0x16   :  { %141 = vmatpush.bf16.msra.mxu0 %v399_v9 }
  0x17   :  { %209 = vmatpush.bf16.msra.mxu1 %v407_v14  ;;  %276 = vmatpush.bf16.msra.mxu2 %v416_v29 }
  0x1a   :  { %142 = vmatpush.bf16.msra.mxu0 %v398_v10 }
  0x1b   :  { %210 = vmatpush.bf16.msra.mxu1 %v406_v15  ;;  %277 = vmatpush.bf16.msra.mxu2 %v415_v30 }
  0x1e   :  { %143 = vmatpush.bf16.msra.mxu0 %v397_v11 }
  0x1f   :  { %211 = vmatpush.bf16.msra.mxu1 %v405_v16  ;;  %278 = vmatpush.bf16.msra.mxu2 %v414_v31 }
  0x21   :  { %144 = vmatmul.bf16.vlgmr.msra.gmra.mxu0 %v396_v12 }
  0x23   :  { %279 = vmatpush.bf16.msra.mxu2 %v413_v32 }
  0x9e   :  { %v145_v21 = vpop.f32.mrf.mxu0 }
  0x9f   :  { %v146_v23 = vadd.f32 %v426_v22, %v145_v21 }
  0xa1   :  { %v150_v26 = vmax.f32 %v146_v23, 0.0 }
  0xa6   :  { %v147_v24 = vpop.f32.mrf.mxu0 }
  0xa7   :  { %v148_v25 = vadd.f32 %v426_v22, %v147_v24 }
  0xa9   :  { %v151_v27 = vmax.f32 %v148_v25, 0.0 }
  0xab   :  { %v152_v28 = vpack.c.bf16 %v151_v27, %v150_v26 }
  0xad   :  { %212 = vmatmul.bf16.vlgmr.msra.gmra.mxu1 %v152_v28 }
 0x12a   :  { %v213_v33 = vpop.f32.mrf.mxu1 }
 0x12b   :  { %v214_v35 = vadd.f32 %v427_v34, %v213_v33 }
 0x12d   :  { %v218_v38 = vmax.f32 %v214_v35, 0.0 }
 0x132   :  { %v215_v36 = vpop.f32.mrf.mxu1 }
 0x133   :  { %v216_v37 = vadd.f32 %v427_v34, %v215_v36 }
 0x135   :  { %v219_v39 = vmax.f32 %v216_v37, 0.0 }
 0x137   :  { %v220_v40 = vpack.c.bf16 %v219_v39, %v218_v38 }
 0x139   :  { %280 = vmatmul.bf16.vlgmr.msra.gmra.mxu2 %v220_v40 }
 0x1bc   :  { %v281_v41 = vpop.f32.mrf.mxu2 }
 0x1bd   :  { %v282_v43 = vadd.f32 %v428_v42, %v281_v41 }
 0x1bf   :  { %v286_v46 = vmax.f32 %v282_v43, 0.0 }
 0x1c4   :  { %v283_v44 = vpop.f32.mrf.mxu2 }
 0x1c5   :  { %v284_v45 = vadd.f32 %v428_v42, %v283_v44 }
 0x1c7   :  { %v287_v47 = vmax.f32 %v284_v45, 0.0 }
 0x1c9   :  { %v424_v48 = vpack.c.bf16 %v287_v47, %v286_v46 }
 0x1cb   :  { %425 = vst [vmem:[%s563_s7] sm:$0xff] %v424_v48  }

</bundles_post_ra>
